<compile_context>
chip_gen: v7x
topology: tpu7x:2x2x1
jax: 0.10.0
libtpu: 0.0.40
codegen_flags: <defaults>
</compile_context>

<pallas_src>
import jax
import jax.numpy as jnp
from jax.experimental import pallas as pl
from jax.experimental.pallas import tpu as pltpu


def _round_up(x, m):
    return ((x + m - 1) // m) * m


def _autoencoder_kernel(x_ref,
                        w1_ref, b1_ref,
                        w2_ref, b2_ref,
                        w3_ref, b3_ref,
                        w4_ref, b4_ref,
                        o_ref):
    """Fused encoder+decoder: 4x (bf16 MXU matmul + f32 bias + ReLU)."""

    def layer(h, w_ref, b_ref):
        # bf16 operands on the MXU with f32 accumulation; bias + ReLU in f32.
        y = jnp.dot(h, w_ref[...], preferred_element_type=jnp.float32)
        return jnp.maximum(y + b_ref[...], 0.0)

    # In-kernel f32 -> bf16 cast of the input (avoids a wrapper-side HBM pass).
    h = layer(x_ref[...].astype(w1_ref.dtype), w1_ref, b1_ref)
    h = layer(h.astype(w2_ref.dtype), w2_ref, b2_ref)
    h = layer(h.astype(w3_ref.dtype), w3_ref, b3_ref)
    h = layer(h.astype(w4_ref.dtype), w4_ref, b4_ref)
    o_ref[...] = h.astype(o_ref.dtype)


def init_autoencoder_params(key, input_dim, hidden_dim1, hidden_dim2,
                            dtype=jnp.float32):
    """Deterministic init matching nn.Linear shapes, stored as (in, out)."""
    dims = [(input_dim, hidden_dim1),
            (hidden_dim1, hidden_dim2),
            (hidden_dim2, hidden_dim1),
            (hidden_dim1, input_dim)]
    params = []
    for (fan_in, fan_out) in dims:
        key, kw, kb = jax.random.split(key, 3)
        bound = 1.0 / jnp.sqrt(fan_in)
        w = jax.random.uniform(kw, (fan_in, fan_out), dtype, -bound, bound)
        # biases kept 2D (1, fan_out) for clean TPU lane layout / broadcasting
        b = jax.random.uniform(kb, (1, fan_out), dtype, -bound, bound)
        params.append((w, b))
    return params


def _pad_params_for_tpu(params, compute_dtype=jnp.bfloat16):
    """Zero-pad hidden dims to lane width (128) and cast weights to bf16.

    Padding is numerically exact: relu(0 + 0) = 0 and the matching zero
    weight rows contribute nothing downstream.
    """
    (w1, b1), (w2, b2), (w3, b3), (w4, b4) = params
    d = w1.shape[0]
    h1, h2 = w1.shape[1], w2.shape[1]
    h1p, h2p = _round_up(h1, 128), _round_up(h2, 128)

    def padw(w, rows, cols):
        return jnp.pad(w, ((0, rows - w.shape[0]), (0, cols - w.shape[1])))

    def padb(b, cols):
        return jnp.pad(b, ((0, 0), (0, cols - b.shape[1])))

    weights = [padw(w1, d, h1p), padw(w2, h1p, h2p),
               padw(w3, h2p, h1p), padw(w4, h1p, d)]
    biases = [padb(b1, h1p), padb(b2, h2p), padb(b3, h1p), padb(b4, d)]
    weights = [w.astype(compute_dtype) for w in weights]
    biases = [b.astype(jnp.float32) for b in biases]
    return weights, biases


def _choose_batch_tile(n, cap=512):
    """Pick the batch tile size.

    * cap=512: big tiles amortize the ~0.35 us/grid-step overhead (measured
      ~85% of HBM roofline at 512-row tiles) while the double-buffered
      x/out blocks + resident weights stay under v5e's 16 MiB scoped-VMEM
      default.
    * For n > 16, aim for >= 2 tiles so the "parallel" grid axis shards
      across v7x's 2 TensorCores; tile rows are a multiple of 16 (bf16
      sublane packing). The last tile may be partial.
    * For tiny batches, a single exact tile (block dim == array dim) avoids
      any padding.
    """
    if n <= 16:
        return n
    tm = _round_up((n + 1) // 2, 16)
    return min(cap, tm)


def autoencoder_forward(x, params, compute_dtype=jnp.bfloat16):
    """x: NCHW array. Returns same shape, matching PyTorch forward()."""
    n = x.shape[0]
    x_flat = x.reshape(n, -1)
    input_dim = x_flat.shape[1]

    (w1, w2, w3, w4), (b1, b2, b3, b4) = _pad_params_for_tpu(
        params, compute_dtype)

    tm = _choose_batch_tile(n)
    num_tiles = pl.cdiv(n, tm)

    # Constant index_map -> block index never changes -> weights DMA'd once
    # and held resident in VMEM across all batch tiles.
    resident = lambda shape: pl.BlockSpec(shape, lambda i: (0, 0))

    out_dtype = x.dtype  # write the final dtype directly from the kernel

    h1p, h2p = w1.shape[1], w2.shape[1]
    flops = 2 * n * (input_dim * h1p + h1p * h2p + h2p * h1p
                     + h1p * input_dim)
    bytes_accessed = (
        n * input_dim * x_flat.dtype.itemsize           # input read
        + n * input_dim * jnp.dtype(out_dtype).itemsize  # output write
        + sum(a.size * a.dtype.itemsize
              for a in (w1, b1, w2, b2, w3, b3, w4, b4)))

    out_flat = pl.pallas_call(
        _autoencoder_kernel,
        out_shape=jax.ShapeDtypeStruct((n, input_dim), out_dtype),
        grid=(num_tiles,),
        in_specs=[
            pl.BlockSpec((tm, input_dim), lambda i: (i, 0)),
            resident(w1.shape), resident(b1.shape),
            resident(w2.shape), resident(b2.shape),
            resident(w3.shape), resident(b3.shape),
            resident(w4.shape), resident(b4.shape),
        ],
        out_specs=pl.BlockSpec((tm, input_dim), lambda i: (i, 0)),
        compiler_params=pltpu.CompilerParams(
            dimension_semantics=("parallel",)),
        cost_estimate=pl.CostEstimate(flops=flops, transcendentals=0,
                                      bytes_accessed=bytes_accessed),
    )(x_flat, w1, b1, w2, b2, w3, b3, w4, b4)

    return out_flat.reshape(x.shape)


def _reference_forward(x, params):
    """Pure-JAX f32 reference of the PyTorch forward."""
    h = x.reshape(x.shape[0], -1)
    for (w, b) in params:
        h = jnp.maximum(h @ w + b, 0.0)
    return h.reshape(x.shape)


if __name__ == "__main__":
    key = jax.random.PRNGKey(0)
    k_x, k_p, k_x2 = jax.random.split(key, 3)

    # Small shapes consistent with the module's forward (NCHW image input).
    batch, channels, spatial = 2, 4, 16
    input_dim = channels * spatial * spatial   # 1024
    hidden_dim1, hidden_dim2 = 128, 32

    x = jax.random.normal(k_x, (batch, channels, spatial, spatial),
                          jnp.float32)
    params = init_autoencoder_params(k_p, input_dim, hidden_dim1, hidden_dim2)

    fwd = jax.jit(autoencoder_forward)
    out = jax.block_until_ready(fwd(x, params))
    ref = _reference_forward(x, params)
    assert out.shape == x.shape
    # bf16 matmul operands with f32 accumulation -> relaxed tolerance vs the
    # pure f32 reference.
    assert jnp.allclose(out, ref, atol=5e-2, rtol=5e-2), "mismatch (small)"

    # Exercise the multi-tile path with a partial last tile (also the
    # >=2-tile split used for v7x megacore sharding).
    x2 = jax.random.normal(k_x2, (50, channels, spatial, spatial),
                           jnp.float32)
    out2 = jax.block_until_ready(fwd(x2, params))
    ref2 = _reference_forward(x2, params)
    assert out2.shape == x2.shape
    assert jnp.allclose(out2, ref2, atol=5e-2, rtol=5e-2), "mismatch (multi)"

    print("KERNEL_OK")
</pallas_src>

<mosaic_0001>
module attributes {stable_mosaic.version = 11 : i64} {
  func.func @_autoencoder_kernel(%arg0: i32, %arg1: memref<2x1024xf32, #tpu.memory_space<vmem>>, %arg2: memref<1024x128xbf16, #tpu.memory_space<vmem>>, %arg3: memref<1x128xf32, #tpu.memory_space<vmem>>, %arg4: memref<128x128xbf16, #tpu.memory_space<vmem>>, %arg5: memref<1x128xf32, #tpu.memory_space<vmem>>, %arg6: memref<128x128xbf16, #tpu.memory_space<vmem>>, %arg7: memref<1x128xf32, #tpu.memory_space<vmem>>, %arg8: memref<128x1024xbf16, #tpu.memory_space<vmem>>, %arg9: memref<1x1024xf32, #tpu.memory_space<vmem>>, %arg10: memref<2x1024xf32, #tpu.memory_space<vmem>>) attributes {dimension_semantics = [#tpu.dimension_semantics<parallel>], iteration_bounds = array<i64: 1>, scalar_prefetch = 0 : i64, scratch_operands = 0 : i64, tpu.core_type = #tpu.core_type<tc>, window_params = [{transform_indices = @transform_0, window_bounds = array<i64: 2, 1024>}, {pipeline_mode = #tpu.pipeline_mode<synchronous>, transform_indices = @transform_1, window_bounds = array<i64: 1024, 128>}, {pipeline_mode = #tpu.pipeline_mode<synchronous>, transform_indices = @transform_2, window_bounds = array<i64: 1, 128>}, {pipeline_mode = #tpu.pipeline_mode<synchronous>, transform_indices = @transform_3, window_bounds = array<i64: 128, 128>}, {pipeline_mode = #tpu.pipeline_mode<synchronous>, transform_indices = @transform_4, window_bounds = array<i64: 1, 128>}, {pipeline_mode = #tpu.pipeline_mode<synchronous>, transform_indices = @transform_5, window_bounds = array<i64: 128, 128>}, {pipeline_mode = #tpu.pipeline_mode<synchronous>, transform_indices = @transform_6, window_bounds = array<i64: 1, 128>}, {pipeline_mode = #tpu.pipeline_mode<synchronous>, transform_indices = @transform_7, window_bounds = array<i64: 128, 1024>}, {pipeline_mode = #tpu.pipeline_mode<synchronous>, transform_indices = @transform_8, window_bounds = array<i64: 1, 1024>}, {transform_indices = @transform_9, window_bounds = array<i64: 2, 1024>}]} {
    %c0 = arith.constant 0 : index
    %c0_0 = arith.constant 0 : index
    %0 = vector.load %arg1[%c0, %c0_0] : memref<2x1024xf32, #tpu.memory_space<vmem>>, vector<2x1024xf32>
    %1 = arith.truncf %0 : vector<2x1024xf32> to vector<2x1024xbf16>
    %c0_1 = arith.constant 0 : index
    %c0_2 = arith.constant 0 : index
    %2 = vector.load %arg2[%c0_1, %c0_2] : memref<1024x128xbf16, #tpu.memory_space<vmem>>, vector<1024x128xbf16>
    %cst = arith.constant dense<0.000000e+00> : vector<2x128xf32>
    %3 = tpu.matmul %1, %2, %cst {dimension_numbers = #tpu.dot_dimension_numbers<[1], [0], [0], [1], [0, 0, 1, 1], [], []>} : vector<2x1024xbf16>, vector<1024x128xbf16>, vector<2x128xf32> -> vector<2x128xf32>
    %c0_3 = arith.constant 0 : index
    %c0_4 = arith.constant 0 : index
    %4 = vector.load %arg3[%c0_3, %c0_4] : memref<1x128xf32, #tpu.memory_space<vmem>>, vector<1x128xf32>
    %5 = vector.broadcast %4 : vector<1x128xf32> to vector<2x128xf32>
    %6 = arith.addf %3, %5 : vector<2x128xf32>
    %cst_5 = arith.constant 0.000000e+00 : f32
    %7 = vector.broadcast %cst_5 : f32 to vector<2x128xf32>
    %8 = arith.maximumf %6, %7 : vector<2x128xf32>
    %9 = arith.truncf %8 : vector<2x128xf32> to vector<2x128xbf16>
    %c0_6 = arith.constant 0 : index
    %c0_7 = arith.constant 0 : index
    %10 = vector.load %arg4[%c0_6, %c0_7] : memref<128x128xbf16, #tpu.memory_space<vmem>>, vector<128x128xbf16>
    %cst_8 = arith.constant dense<0.000000e+00> : vector<2x128xf32>
    %11 = tpu.matmul %9, %10, %cst_8 {dimension_numbers = #tpu.dot_dimension_numbers<[1], [0], [0], [1], [0, 0, 1, 1], [], []>} : vector<2x128xbf16>, vector<128x128xbf16>, vector<2x128xf32> -> vector<2x128xf32>
    %c0_9 = arith.constant 0 : index
    %c0_10 = arith.constant 0 : index
    %12 = vector.load %arg5[%c0_9, %c0_10] : memref<1x128xf32, #tpu.memory_space<vmem>>, vector<1x128xf32>
    %13 = vector.broadcast %12 : vector<1x128xf32> to vector<2x128xf32>
    %14 = arith.addf %11, %13 : vector<2x128xf32>
    %cst_11 = arith.constant 0.000000e+00 : f32
    %15 = vector.broadcast %cst_11 : f32 to vector<2x128xf32>
    %16 = arith.maximumf %14, %15 : vector<2x128xf32>
    %17 = arith.truncf %16 : vector<2x128xf32> to vector<2x128xbf16>
    %c0_12 = arith.constant 0 : index
    %c0_13 = arith.constant 0 : index
    %18 = vector.load %arg6[%c0_12, %c0_13] : memref<128x128xbf16, #tpu.memory_space<vmem>>, vector<128x128xbf16>
    %cst_14 = arith.constant dense<0.000000e+00> : vector<2x128xf32>
    %19 = tpu.matmul %17, %18, %cst_14 {dimension_numbers = #tpu.dot_dimension_numbers<[1], [0], [0], [1], [0, 0, 1, 1], [], []>} : vector<2x128xbf16>, vector<128x128xbf16>, vector<2x128xf32> -> vector<2x128xf32>
    %c0_15 = arith.constant 0 : index
    %c0_16 = arith.constant 0 : index
    %20 = vector.load %arg7[%c0_15, %c0_16] : memref<1x128xf32, #tpu.memory_space<vmem>>, vector<1x128xf32>
    %21 = vector.broadcast %20 : vector<1x128xf32> to vector<2x128xf32>
    %22 = arith.addf %19, %21 : vector<2x128xf32>
    %cst_17 = arith.constant 0.000000e+00 : f32
    %23 = vector.broadcast %cst_17 : f32 to vector<2x128xf32>
    %24 = arith.maximumf %22, %23 : vector<2x128xf32>
    %25 = arith.truncf %24 : vector<2x128xf32> to vector<2x128xbf16>
    %c0_18 = arith.constant 0 : index
    %c0_19 = arith.constant 0 : index
    %26 = vector.load %arg8[%c0_18, %c0_19] : memref<128x1024xbf16, #tpu.memory_space<vmem>>, vector<128x1024xbf16>
    %cst_20 = arith.constant dense<0.000000e+00> : vector<2x1024xf32>
    %27 = tpu.matmul %25, %26, %cst_20 {dimension_numbers = #tpu.dot_dimension_numbers<[1], [0], [0], [1], [0, 0, 1, 1], [], []>} : vector<2x128xbf16>, vector<128x1024xbf16>, vector<2x1024xf32> -> vector<2x1024xf32>
    %c0_21 = arith.constant 0 : index
    %c0_22 = arith.constant 0 : index
    %28 = vector.load %arg9[%c0_21, %c0_22] : memref<1x1024xf32, #tpu.memory_space<vmem>>, vector<1x1024xf32>
    %29 = vector.broadcast %28 : vector<1x1024xf32> to vector<2x1024xf32>
    %30 = arith.addf %27, %29 : vector<2x1024xf32>
    %cst_23 = arith.constant 0.000000e+00 : f32
    %31 = vector.broadcast %cst_23 : f32 to vector<2x1024xf32>
    %32 = arith.maximumf %30, %31 : vector<2x1024xf32>
    %c0_24 = arith.constant 0 : index
    %c0_25 = arith.constant 0 : index
    %33 = vector.load %arg10[%c0_24, %c0_25] : memref<2x1024xf32, #tpu.memory_space<vmem>>, vector<2x1024xf32>
    tpu.vector_store %arg10[%c0_24, %c0_25], %32 {strides = array<i32>} : memref<2x1024xf32, #tpu.memory_space<vmem>>, vector<2x1024xf32>,
    return
  }
  func.func @transform_0(%arg0: i32) -> (i32, i32) {
    %c0_i32 = arith.constant 0 : i32
    %c0_i32_0 = arith.constant 0 : i32
    return %arg0, %c0_i32 : i32, i32
  }
  func.func @transform_1(%arg0: i32) -> (i32, i32) {
    %c0_i32 = arith.constant 0 : i32
    %c0_i32_0 = arith.constant 0 : i32
    %c0_i32_1 = arith.constant 0 : i32
    return %c0_i32, %c0_i32_0 : i32, i32
  }
  func.func @transform_2(%arg0: i32) -> (i32, i32) {
    %c0_i32 = arith.constant 0 : i32
    %c0_i32_0 = arith.constant 0 : i32
    %c0_i32_1 = arith.constant 0 : i32
    return %c0_i32, %c0_i32_0 : i32, i32
  }
  func.func @transform_3(%arg0: i32) -> (i32, i32) {
    %c0_i32 = arith.constant 0 : i32
    %c0_i32_0 = arith.constant 0 : i32
    %c0_i32_1 = arith.constant 0 : i32
    return %c0_i32, %c0_i32_0 : i32, i32
  }
  func.func @transform_4(%arg0: i32) -> (i32, i32) {
    %c0_i32 = arith.constant 0 : i32
    %c0_i32_0 = arith.constant 0 : i32
    %c0_i32_1 = arith.constant 0 : i32
    return %c0_i32, %c0_i32_0 : i32, i32
  }
  func.func @transform_5(%arg0: i32) -> (i32, i32) {
    %c0_i32 = arith.constant 0 : i32
    %c0_i32_0 = arith.constant 0 : i32
    %c0_i32_1 = arith.constant 0 : i32
    return %c0_i32, %c0_i32_0 : i32, i32
  }
  func.func @transform_6(%arg0: i32) -> (i32, i32) {
    %c0_i32 = arith.constant 0 : i32
    %c0_i32_0 = arith.constant 0 : i32
    %c0_i32_1 = arith.constant 0 : i32
    return %c0_i32, %c0_i32_0 : i32, i32
  }
  func.func @transform_7(%arg0: i32) -> (i32, i32) {
    %c0_i32 = arith.constant 0 : i32
    %c0_i32_0 = arith.constant 0 : i32
    %c0_i32_1 = arith.constant 0 : i32
    return %c0_i32, %c0_i32_0 : i32, i32
  }
  func.func @transform_8(%arg0: i32) -> (i32, i32) {
    %c0_i32 = arith.constant 0 : i32
    %c0_i32_0 = arith.constant 0 : i32
    %c0_i32_1 = arith.constant 0 : i32
    return %c0_i32, %c0_i32_0 : i32, i32
  }
  func.func @transform_9(%arg0: i32) -> (i32, i32) {
    %c0_i32 = arith.constant 0 : i32
    %c0_i32_0 = arith.constant 0 : i32
    return %arg0, %c0_i32 : i32, i32
  }
}

</mosaic_0001>

<bundles_post_ra>
// kernel: autoencoder_forward.1
= control target key start
LH: loop header
LB: loop body
LE: loop exit
PB: predicated region body
PF: predicated region fallthrough
CT: control target
= control target key end

     0   :  { %v2021_v22 = vmov 1983009808   ;;  %v41_v24 = vlaneseq  ;;  %vm2023_vm0 = vmmov 0   ;;  %s2588_s1 = inlined_call_operand.vmem [shape: bf16[1024,128], index: 1, kind: input, shape index: {}]   ;;  %s2589_s0 = inlined_call_operand.vmem [shape: f32[2,1024], index: 0, kind: input, shape index: {}]   ;;  %s2590_s3 = inlined_call_operand.vmem [shape: bf16[128,128], index: 3, kind: input, shape index: {}]   ;;  %s2591_s5 = inlined_call_operand.vmem [shape: bf16[128,128], index: 5, kind: input, shape index: {}]   ;;  %s2592_s2 = inlined_call_operand.vmem [shape: f32[1,128], index: 2, kind: input, shape index: {}]   ;;  %s2593_s7 = inlined_call_operand.vmem [shape: bf16[128,1024], index: 7, kind: input, shape index: {}]   ;;  %s2594_s4 = inlined_call_operand.vmem [shape: f32[1,128], index: 4, kind: input, shape index: {}]   ;;  %s2595_s6 = inlined_call_operand.vmem [shape: f32[1,128], index: 6, kind: input, shape index: {}]   ;;  %s2596_s8 = inlined_call_operand.vmem [shape: f32[1,1024], index: 8, kind: input, shape index: {}]   ;;  %s2597_s9 = inlined_call_operand.vmem [shape: f32[2,1024], index: 9, kind: output, shape index: {}]  }
   0x1   :  { %v1939_v0 = vld [vmem:[%s2588_s1 + $0x40] sm:$0xff]   ;;  %v1943_v4 = vld [vmem:[%s2588_s1 + $0x48] sm:$0xff]   ;;  %v1947_v8 = vld [vmem:[%s2588_s1 + $0x50] sm:$0xff]   ;;  %v39_v23 = vunpack.c.l.s4 %v2021_v22 }
   0x2   :  { %v1940_v1 = vld [vmem:[%s2588_s1 + $0xc0] sm:$0xff]   ;;  %1789 = vmatprep.subr.bf16.mxu0 %v1939_v0  ;;  %v1944_v5 = vld [vmem:[%s2588_s1 + $0xc8] sm:$0xff]   ;;  %v1948_v9 = vld [vmem:[%s2588_s1 + $0xd0] sm:$0xff]   ;;  %v2153_v30 = vshrl.u32 %v41_v24, 7 }
   0x3   :  { %v1941_v2 = vld [vmem:[%s2588_s1] sm:$0xff]   ;;  %1811 = vmatprep.subr.bf16.mxu1 %v1940_v1  ;;  %v1945_v6 = vld [vmem:[%s2588_s1 + $0x8] sm:$0xff]   ;;  %v1949_v10 = vld [vmem:[%s2588_s1 + $0x10] sm:$0xff]   ;;  %v40_v29 = vunpack.c.0.s8 %v39_v23 }
   0x4   :  { %v1942_v3 = vld [vmem:[%s2588_s1 + $0x80] sm:$0xff]   ;;  %1790 = vmatpush3.bf16.msra.mxu0 %v1941_v2  ;;  %v1946_v7 = vld [vmem:[%s2588_s1 + $0x88] sm:$0xff]   ;;  %v1950_v11 = vld [vmem:[%s2588_s1 + $0x90] sm:$0xff]  }
   0x5   :  { %1812 = vmatpush3.bf16.msra.mxu1 %v1942_v3  ;;  %1791 = vmatprep.subr.bf16.mxu0 %v1943_v4  ;;  %v1951_v12 = vld [vmem:[%s2588_s1 + $0x58] sm:$0xff]   ;;  %v1955_v16 = vld [vmem:[%s2588_s1 + $0x60] sm:$0xff]   ;;  %v1959_v20 = vld [vmem:[%s2588_s1 + $0x68] sm:$0xff]   ;;  %v2168_v35 = vsub.s32 %v40_v29, %v2153_v30 }
   0x6   :  { %1813 = vmatprep.subr.bf16.mxu1 %v1944_v5  ;;  %v1952_v13 = vld [vmem:[%s2588_s1 + $0xd8] sm:$0xff]   ;;  %v1956_v17 = vld [vmem:[%s2588_s1 + $0xe0] sm:$0xff]   ;;  %v1960_v21 = vld [vmem:[%s2588_s1 + $0xe8] sm:$0xff]  }
   0x7   :  { %v1953_v14 = vld [vmem:[%s2588_s1 + $0x18] sm:$0xff]   ;;  %v1957_v18 = vld [vmem:[%s2588_s1 + $0x20] sm:$0xff]   ;;  %v1961_v25 = vld [vmem:[%s2588_s1 + $0x28] sm:$0xff]  }
   0x8   :  { %1792 = vmatpush3.bf16.msra.mxu0 %v1945_v6  ;;  %v1954_v15 = vld [vmem:[%s2588_s1 + $0x98] sm:$0xff]   ;;  %v1958_v19 = vld [vmem:[%s2588_s1 + $0xa0] sm:$0xff]   ;;  %v1962_v26 = vld [vmem:[%s2588_s1 + $0xa8] sm:$0xff]  }
   0x9   :  { %1814 = vmatpush3.bf16.msra.mxu1 %v1946_v7  ;;  %1793 = vmatprep.subr.bf16.mxu0 %v1947_v8  ;;  %v1963_v27 = vld [vmem:[%s2588_s1 + $0x70] sm:$0xff]   ;;  %v1967_v33 = vld [vmem:[%s2588_s1 + $0x78] sm:$0xff]   ;;  %v33_v38 = vld [vmem:[%s2589_s0] sm:$0xff] }
   0xa   :  { %1815 = vmatprep.subr.bf16.mxu1 %v1948_v9  ;;  %v1964_v28 = vld [vmem:[%s2588_s1 + $0xf0] sm:$0xff]   ;;  %v1968_v34 = vld [vmem:[%s2588_s1 + $0xf8] sm:$0xff]   ;;  %v34_v39 = vld [vmem:[%s2589_s0 + $0x8] sm:$0xff]  ;;  %v44_v40 = vrot.slane %v33_v38, %v2168_v35  ;;  %v37_v42 = vcombine.high %v33_v38, %v33_v38 }
   0xb   :  { %v1965_v31 = vld [vmem:[%s2588_s1 + $0x30] sm:$0xff]   ;;  %v1969_v36 = vld [vmem:[%s2588_s1 + $0x38] sm:$0xff]   ;;  %v54_v41 = vcombine.high %v34_v39, %v34_v39  ;;  %v1973_v43 = vld [vmem:[%s2588_s1 + $0x140] sm:$0xff]   ;;  %v2187_v44 = vrot.slane %v34_v39, %v2168_v35 }
   0xc   :  { %1794 = vmatpush3.bf16.msra.mxu0 %v1949_v10  ;;  %v1966_v32 = vld [vmem:[%s2588_s1 + $0xb0] sm:$0xff]   ;;  %v1970_v37 = vld [vmem:[%s2588_s1 + $0xb8] sm:$0xff]   ;;  %v1974_v45 = vld [vmem:[%s2588_s1 + $0x1c0] sm:$0xff]   ;;  %v52_v46 = vcombine.high %v44_v40, %v44_v40  ;;  %v51_v47 = vrot.slane %v37_v42, %v2168_v35  ;;  %v79_v49 = vpack.c.bf16 %v44_v40, %v44_v40 }
   0xd   :  { %1816 = vmatpush3.bf16.msra.mxu1 %v1950_v11  ;;  %1795 = vmatprep.subr.bf16.mxu0 %v1951_v12  ;;  %v69_v48 = vcombine.high %v2187_v44, %v2187_v44  ;;  %v2196_v50 = vrot.slane %v54_v41, %v2168_v35  ;;  %v1975_v53 = vld [vmem:[%s2588_s1 + $0x100] sm:$0xff]   ;;  %v1977_v55 = vld [vmem:[%s2588_s1 + $0x148] sm:$0xff]   ;;  %v1981_v63 = vld [vmem:[%s2588_s1 + $0x150] sm:$0xff]   ;;  %v83_v24 = vpack.c.bf16 %v2187_v44, %v2187_v44 }
   0xe   :  { %1817 = vmatprep.subr.bf16.mxu1 %v1952_v13  ;;  %v80_v51 = vpack.c.bf16 %v52_v46, %v52_v46  ;;  %v53_v52 = vcombine.high %v51_v47, %v51_v47  ;;  %v81_v54 = vpack.c.bf16 %v51_v47, %v51_v47  ;;  %v1976_v58 = vld [vmem:[%s2588_s1 + $0x180] sm:$0xff]   ;;  %v1978_v60 = vld [vmem:[%s2588_s1 + $0x1c8] sm:$0xff]   ;;  %v1982_v1 = vld [vmem:[%s2588_s1 + $0x1d0] sm:$0xff]  }
   0xf   :  { %v70_v56 = vcombine.high %v2196_v50, %v2196_v50  ;;  %v84_v59 = vpack.c.bf16 %v69_v48, %v69_v48  ;;  %v1979_v62 = vld [vmem:[%s2588_s1 + $0x108] sm:$0xff]   ;;  %v1983_v2 = vld [vmem:[%s2588_s1 + $0x110] sm:$0xff]   ;;  %v1985_v3 = vld [vmem:[%s2588_s1 + $0x158] sm:$0xff]  }
  0x10   :  { %1796 = vmatpush3.bf16.msra.mxu0 %v1953_v14  ;;  %638 = vmatprep.mubr.bf16.mxu0 %v80_v51  ;;  %v82_v57 = vpack.c.bf16 %v53_v52, %v53_v52  ;;  %v1980_v0 = vld [vmem:[%s2588_s1 + $0x188] sm:$0xff]   ;;  %v1984_v4 = vld [vmem:[%s2588_s1 + $0x190] sm:$0xff]   ;;  %v1986_v5 = vld [vmem:[%s2588_s1 + $0x1d8] sm:$0xff]  }
  0x11   :  { %1818 = vmatpush3.bf16.msra.mxu1 %v1954_v15  ;;  %1797 = vmatprep.subr.bf16.mxu0 %v1955_v16  ;;  %v86_v61 = vpack.c.bf16 %v70_v56, %v70_v56  ;;  %v1987_v6 = vld [vmem:[%s2588_s1 + $0x118] sm:$0xff]   ;;  %v1989_v7 = vld [vmem:[%s2588_s1 + $0x160] sm:$0xff]   ;;  %v1993_v11 = vld [vmem:[%s2588_s1 + $0x168] sm:$0xff]  }
  0x12   :  { %1819 = vmatprep.subr.bf16.mxu1 %v1956_v17  ;;  %678 = vmatprep.mubr.bf16.mxu1 %v82_v57  ;;  %v1988_v8 = vld [vmem:[%s2588_s1 + $0x198] sm:$0xff]   ;;  %v1990_v9 = vld [vmem:[%s2588_s1 + $0x1e0] sm:$0xff]   ;;  %v1994_v13 = vld [vmem:[%s2588_s1 + $0x1e8] sm:$0xff]  }
  0x13   :  { %v1991_v10 = vld [vmem:[%s2588_s1 + $0x120] sm:$0xff]   ;;  %v1995_v14 = vld [vmem:[%s2588_s1 + $0x128] sm:$0xff]   ;;  %v1997_v15 = vld [vmem:[%s2588_s1 + $0x170] sm:$0xff]  }
  0x14   :  { %1798 = vmatpush3.bf16.msra.mxu0 %v1957_v18  ;;  %v1992_v12 = vld [vmem:[%s2588_s1 + $0x1a0] sm:$0xff]   ;;  %v1996_v16 = vld [vmem:[%s2588_s1 + $0x1a8] sm:$0xff]   ;;  %v1998_v17 = vld [vmem:[%s2588_s1 + $0x1f0] sm:$0xff]  }
  0x15   :  { %1820 = vmatpush3.bf16.msra.mxu1 %v1958_v19  ;;  %1799 = vmatprep.subr.bf16.mxu0 %v1959_v20  ;;  %v1999_v18 = vld [vmem:[%s2588_s1 + $0x130] sm:$0xff]   ;;  %v2001_v19 = vld [vmem:[%s2588_s1 + $0x178] sm:$0xff]   ;;  %v2014_v38 = vld [vmem:[%s2591_s5 + $0x8] sm:$0xff]  }
  0x16   :  { %1821 = vmatprep.subr.bf16.mxu1 %v1960_v21  ;;  %v2000_v20 = vld [vmem:[%s2588_s1 + $0x1b0] sm:$0xff]   ;;  %v2002_v21 = vld [vmem:[%s2588_s1 + $0x1f8] sm:$0xff]   ;;  %v2017_v41 = vld [vmem:[%s2591_s5 + $0x20] sm:$0xff]  }
  0x17   :  { %v2003_v22 = vld [vmem:[%s2588_s1 + $0x138] sm:$0xff]   ;;  %v2007_v29 = vld [vmem:[%s2590_s3 + $0x10] sm:$0xff]   ;;  %v2018_v42 = vld [vmem:[%s2591_s5 + $0x28] sm:$0xff]  }
  0x18   :  { %1800 = vmatpush3.bf16.msra.mxu0 %v1961_v25  ;;  %v2004_v23 = vld [vmem:[%s2588_s1 + $0x1b8] sm:$0xff]   ;;  %v85_v25 = vpack.c.bf16 %v2196_v50, %v2196_v50  ;;  %v2015_v39 = vld [vmem:[%s2591_s5 + $0x10] sm:$0xff]   ;;  %v1642_v44 = vld [vmem:[%s2592_s2] ss:$0 sm:$0xff] }
  0x19   :  { %1822 = vmatpush3.bf16.msra.mxu1 %v1962_v26  ;;  %1801 = vmatprep.subr.bf16.mxu0 %v1963_v27  ;;  %v2022_v26 = vmov 0.0   ;;  %v2005_v27 = vld [vmem:[%s2590_s3] sm:$0xff]   ;;  %v2016_v40 = vld [vmem:[%s2591_s5 + $0x18] sm:$0xff]  }
  0x1a   :  { %1823 = vmatprep.subr.bf16.mxu1 %v1964_v28  ;;  %v2006_v28 = vld [vmem:[%s2590_s3 + $0x8] sm:$0xff]  }
  0x1c   :  { %1802 = vmatpush3.bf16.msra.mxu0 %v1965_v31  ;;  %v2008_v31 = vld [vmem:[%s2590_s3 + $0x18] sm:$0xff]  }
  0x1d   :  { %1824 = vmatpush3.bf16.msra.mxu1 %v1966_v32  ;;  %1803 = vmatprep.subr.bf16.mxu0 %v1967_v33  ;;  %v2009_v32 = vld [vmem:[%s2590_s3 + $0x20] sm:$0xff]   ;;  %v2010_v33 = vld [vmem:[%s2590_s3 + $0x28] sm:$0xff]  }
  0x1e   :  { %1825 = vmatprep.subr.bf16.mxu1 %v1968_v34  ;;  %v2011_v34 = vld [vmem:[%s2590_s3 + $0x30] sm:$0xff]  }
  0x20   :  { %1804 = vmatpush3.bf16.msra.mxu0 %v1969_v36  ;;  %v2012_v36 = vld [vmem:[%s2590_s3 + $0x38] sm:$0xff]  }
  0x21   :  { %1826 = vmatpush3.bf16.msra.mxu1 %v1970_v37  ;;  %1833 = vmatprep.subr.bf16.mxu0 %v1973_v43  ;;  %v2013_v37 = vld [vmem:[%s2591_s5] sm:$0xff]  }
  0x22   :  { %1855 = vmatprep.subr.bf16.mxu1 %v1974_v45 }
  0x23   :  { %639 = vmatmul.mubr.bf16.vlgmr.msra.gmra.mrb[0].mxu0 %v79_v49 }
  0x24   :  { %1834 = vmatpush3.bf16.msra.mxu0 %v1975_v53  ;;  %679 = vmatmul.mubr.bf16.vlgmr.msra.gmra.mrb[0].mxu1 %v81_v54 }
  0x25   :  { %1835 = vmatprep.subr.bf16.mxu0 %v1977_v55  ;;  %1856 = vmatpush3.bf16.msra.mxu1 %v1976_v58 }
  0x26   :  { %718 = vmatprep.mubr.bf16.mxu0 %v84_v59  ;;  %1857 = vmatprep.subr.bf16.mxu1 %v1978_v60 }
  0x27   :  { %758 = vmatprep.mubr.bf16.mxu1 %v86_v61 }
  0x28   :  { %1836 = vmatpush3.bf16.msra.mxu0 %v1979_v62 }
  0x29   :  { %1837 = vmatprep.subr.bf16.mxu0 %v1981_v63  ;;  %1858 = vmatpush3.bf16.msra.mxu1 %v1980_v0 }
  0x2a   :  { %1859 = vmatprep.subr.bf16.mxu1 %v1982_v1 }
  0x2c   :  { %1838 = vmatpush3.bf16.msra.mxu0 %v1983_v2 }
  0x2d   :  { %1839 = vmatprep.subr.bf16.mxu0 %v1985_v3  ;;  %1860 = vmatpush3.bf16.msra.mxu1 %v1984_v4 }
  0x2e   :  { %1861 = vmatprep.subr.bf16.mxu1 %v1986_v5 }
  0x30   :  { %1840 = vmatpush3.bf16.msra.mxu0 %v1987_v6  ;;  %v2019_v6 = vld [vmem:[%s2591_s5 + $0x30] sm:$0xff]  }
  0x31   :  { %1841 = vmatprep.subr.bf16.mxu0 %v1989_v7  ;;  %1862 = vmatpush3.bf16.msra.mxu1 %v1988_v8  ;;  %v2020_v7 = vld [vmem:[%s2591_s5 + $0x38] sm:$0xff]   ;;  %v994_v8 = vld [vmem:[%s2593_s7] sm:$0xff] }
  0x32   :  { %1863 = vmatprep.subr.bf16.mxu1 %v1990_v9  ;;  %v998_v9 = vld [vmem:[%s2593_s7 + $0x20] sm:$0xff] }
  0x34   :  { %1842 = vmatpush3.bf16.msra.mxu0 %v1991_v10  ;;  %v995_v10 = vld [vmem:[%s2593_s7 + $0x8] sm:$0xff] }
  0x35   :  { %1843 = vmatprep.subr.bf16.mxu0 %v1993_v11  ;;  %1864 = vmatpush3.bf16.msra.mxu1 %v1992_v12  ;;  %v1725_v11 = vcombine.low %v994_v8, %v998_v9  ;;  %v1726_v12 = vcombine.high %v994_v8, %v998_v9 }
  0x36   :  { %1865 = vmatprep.subr.bf16.mxu1 %v1994_v13  ;;  %v999_v13 = vld [vmem:[%s2593_s7 + $0x28] sm:$0xff] }
  0x38   :  { %1844 = vmatpush3.bf16.msra.mxu0 %v1995_v14  ;;  %v1002_v14 = vld [vmem:[%s2593_s7 + $0x40] sm:$0xff] }
  0x39   :  { %1845 = vmatprep.subr.bf16.mxu0 %v1997_v15  ;;  %1866 = vmatpush3.bf16.msra.mxu1 %v1996_v16  ;;  %v1006_v15 = vld [vmem:[%s2593_s7 + $0x60] sm:$0xff]  ;;  %v1727_v16 = vcombine.low %v995_v10, %v999_v13 }
  0x3a   :  { %1867 = vmatprep.subr.bf16.mxu1 %v1998_v17  ;;  %v1728_v17 = vcombine.high %v995_v10, %v999_v13  ;;  %v1050_v10 = vld [vmem:[%s2593_s7 + $0x1c0] sm:$0xff] }
  0x3c   :  { %1846 = vmatpush3.bf16.msra.mxu0 %v1999_v18  ;;  %v1734_v18 = vcombine.high %v1002_v14, %v1006_v15 }
  0x3d   :  { %1847 = vmatprep.subr.bf16.mxu0 %v2001_v19  ;;  %1868 = vmatpush3.bf16.msra.mxu1 %v2000_v20  ;;  %v1733_v19 = vcombine.low %v1002_v14, %v1006_v15  ;;  %v1010_v20 = vld [vmem:[%s2593_s7 + $0x80] sm:$0xff]  ;;  %v1055_v14 = vld [vmem:[%s2593_s7 + $0x1e8] sm:$0xff] }
  0x3e   :  { %1869 = vmatprep.subr.bf16.mxu1 %v2002_v21  ;;  %v1014_v21 = vld [vmem:[%s2593_s7 + $0xa0] sm:$0xff] }
  0x40   :  { %1848 = vmatpush3.bf16.msra.mxu0 %v2003_v22  ;;  %v1742_v22 = vcombine.high %v1010_v20, %v1014_v21 }
  0x41   :  { %1870 = vmatpush3.bf16.msra.mxu1 %v2004_v23  ;;  %1895 = vmatprep.subr.bf16.mxu0 %v2022_v26  ;;  %v1741_v23 = vcombine.low %v1010_v20, %v1014_v21  ;;  %v997_v20 = vld [vmem:[%s2593_s7 + $0x18] sm:$0xff]  ;;  %v2024_v21 = vmov 0  }
  0x42   :  { %1915 = vmatprep.subr.bf16.mxu1 %v2022_v26 }
  0x43   :  { %719 = vmatmul.mubr.bf16.vlgmr.msra.gmra.mrb[4].mxu0 %v83_v24  ;;  %v1018_v24 = vld [vmem:[%s2593_s7 + $0xc0] sm:$0xff] }
  0x44   :  { %759 = vmatmul.mubr.bf16.vlgmr.msra.gmra.mrb[4].mxu1 %v85_v25  ;;  %1896 = vmatpush3.bf16.msra.mxu0 %v2005_v27  ;;  %v1022_v25 = vld [vmem:[%s2593_s7 + $0xe0] sm:$0xff] }
  0x45   :  { %1897 = vmatprep.subr.bf16.mxu0 %v2022_v26  ;;  %1911 = vmatprep.mubr.msk.bf16.mxu0 %vm2023_vm0, %v2022_v26  ;;  %v1749_v27 = vcombine.low %v1018_v24, %v1022_v25 }
  0x46   :  { %1931 = vmatprep.mubr.msk.bf16.mxu1 %vm2023_vm0, %v2022_v26  ;;  %1916 = vmatpush3.bf16.msra.mxu1 %v2013_v37 }
  0x47   :  { %1917 = vmatprep.subr.bf16.mxu1 %v2022_v26 }
  0x48   :  { %1898 = vmatpush3.bf16.msra.mxu0 %v2006_v28  ;;  %v1026_v28 = vld [vmem:[%s2593_s7 + $0x100] sm:$0xff] }
  0x49   :  { %1899 = vmatprep.subr.bf16.mxu0 %v2022_v26 }
  0x4a   :  { %1918 = vmatpush3.bf16.msra.mxu1 %v2014_v38  ;;  %v1042_v38 = vld [vmem:[%s2593_s7 + $0x180] sm:$0xff] }
  0x4b   :  { %1919 = vmatprep.subr.bf16.mxu1 %v2022_v26 }
  0x4c   :  { %1900 = vmatpush3.bf16.msra.mxu0 %v2007_v29  ;;  %v1030_v29 = vld [vmem:[%s2593_s7 + $0x120] sm:$0xff] }
  0x4d   :  { %1901 = vmatprep.subr.bf16.mxu0 %v2022_v26 }
  0x4e   :  { %1920 = vmatpush3.bf16.msra.mxu1 %v2015_v39  ;;  %v1046_v39 = vld [vmem:[%s2593_s7 + $0x1a0] sm:$0xff] }
  0x4f   :  { %1921 = vmatprep.subr.bf16.mxu1 %v2022_v26 }
  0x50   :  { %1902 = vmatpush3.bf16.msra.mxu0 %v2008_v31  ;;  %v1758_v31 = vcombine.high %v1026_v28, %v1030_v29 }
  0x51   :  { %1903 = vmatprep.subr.bf16.mxu0 %v2022_v26 }
  0x52   :  { %1922 = vmatpush3.bf16.msra.mxu1 %v2016_v40  ;;  %v1774_v40 = vcombine.high %v1042_v38, %v1046_v39 }
  0x53   :  { %1923 = vmatprep.subr.bf16.mxu1 %v2022_v26 }
  0x54   :  { %1904 = vmatpush3.bf16.msra.mxu0 %v2009_v32  ;;  %v1757_v32 = vcombine.low %v1026_v28, %v1030_v29 }
  0x55   :  { %1905 = vmatprep.subr.bf16.mxu0 %v2022_v26 }
  0x56   :  { %1924 = vmatpush3.bf16.msra.mxu1 %v2017_v41  ;;  %v1773_v41 = vcombine.low %v1042_v38, %v1046_v39 }
  0x57   :  { %1925 = vmatprep.subr.bf16.mxu1 %v2022_v26 }
  0x58   :  { %1906 = vmatpush3.bf16.msra.mxu0 %v2010_v33  ;;  %v1034_v33 = vld [vmem:[%s2593_s7 + $0x140] sm:$0xff] }
  0x59   :  { %1907 = vmatprep.subr.bf16.mxu0 %v2022_v26 }
  0x5a   :  { %1926 = vmatpush3.bf16.msra.mxu1 %v2018_v42  ;;  %v1707_v42 = vld [vmem:[%s2594_s4] ss:$0 sm:$0xff] }
  0x5b   :  { %1927 = vmatprep.subr.bf16.mxu1 %v2022_v26 }
  0x5c   :  { %1908 = vmatpush3.bf16.msra.mxu0 %v2011_v34  ;;  %v1038_v34 = vld [vmem:[%s2593_s7 + $0x160] sm:$0xff] }
  0x5d   :  { %1909 = vmatprep.subr.bf16.mxu0 %v2022_v26  ;;  %v1765_v37 = vcombine.low %v1034_v33, %v1038_v34 }
  0x5e   :  { %1928 = vmatpush3.bf16.msra.mxu1 %v2019_v6  ;;  %v1047_v6 = vld [vmem:[%s2593_s7 + $0x1a8] sm:$0xff] }
  0x5f   :  { %1929 = vmatprep.subr.bf16.mxu1 %v2022_v26  ;;  %v1750_v26 = vcombine.high %v1018_v24, %v1022_v25  ;;  %v1001_v24 = vld [vmem:[%s2593_s7 + $0x38] sm:$0xff] }
  0x60   :  { %1910 = vmatpush3.bf16.msra.mxu0 %v2012_v36  ;;  %v1766_v36 = vcombine.high %v1034_v33, %v1038_v34  ;;  %v1731_v25 = vcombine.low %v997_v20, %v1001_v24  ;;  %v1008_v34 = vld [vmem:[%s2593_s7 + $0x70] sm:$0xff] }
  0x61   :  { %1420 = vmatprep.subr.bf16.mxu0 %v1726_v12  ;;  %v1051_v12 = vld [vmem:[%s2593_s7 + $0x1c8] sm:$0xff] }
  0x62   :  { %1930 = vmatpush3.bf16.msra.mxu1 %v2020_v7 }
  0x63   :  { %1461 = vmatprep.subr.bf16.mxu1 %v1728_v17  ;;  %v1784_v17 = vcombine.high %v1051_v12, %v1055_v14 }
  0xf6   :  { %v1805_v43 = vpop.f32.mrb[0].mxu0 }
  0xf7   :  { %v1806_v45 = vpop.f32.mrb[1].mxu0  ;;  %v1827_v46 = vpop.f32.mrb[0].mxu1 }
  0xf8   :  { %v1807_v47 = vadd.f32 %v1806_v45, %v1805_v43  ;;  %v1808_v48 = vpop.f32.mrb[2].mxu0  ;;  %v1828_v49 = vpop.f32.mrb[1].mxu1 }
  0xf9   :  { %v1809_v50 = vpop.f32.mrb[3].mxu0  ;;  %v1829_v52 = vadd.f32 %v1828_v49, %v1827_v46  ;;  %v1830_v53 = vpop.f32.mrb[2].mxu1  ;;  %v1007_v48 = vld [vmem:[%s2593_s7 + $0x68] sm:$0xff] }
  0xfa   :  { %v641_v51 = vadd.f32 %v1807_v47, %v1642_v44  ;;  %v1831_v54 = vpop.f32.mrb[3].mxu1  ;;  %v1003_v47 = vld [vmem:[%s2593_s7 + $0x48] sm:$0xff] }
  0xfb   :  { %v1011_v53 = vld [vmem:[%s2593_s7 + $0x88] sm:$0xff] }
  0xfc   :  { %v681_v55 = vadd.f32 %v1829_v52, %v641_v51  ;;  %v1736_v52 = vcombine.high %v1003_v47, %v1007_v48  ;;  %v1015_v54 = vld [vmem:[%s2593_s7 + $0xa8] sm:$0xff] }
 0x116   :  { %v1849_v56 = vpop.f32.mrb[4].mxu0 }
 0x117   :  { %v1850_v57 = vpop.f32.mrb[5].mxu0  ;;  %v1871_v58 = vpop.f32.mrb[4].mxu1 }
 0x118   :  { %v1851_v59 = vadd.f32 %v1850_v57, %v1849_v56  ;;  %v1852_v60 = vpop.f32.mrb[6].mxu0  ;;  %v1872_v61 = vpop.f32.mrb[5].mxu1  ;;  %v1744_v56 = vcombine.high %v1011_v53, %v1015_v54  ;;  %v1019_v57 = vld [vmem:[%s2593_s7 + $0xc8] sm:$0xff] }
 0x119   :  { %v1853_v62 = vpop.f32.mrb[7].mxu0  ;;  %v1873_v0 = vadd.f32 %v1872_v61, %v1871_v58  ;;  %v1874_v1 = vpop.f32.mrb[6].mxu1  ;;  %v1023_v58 = vld [vmem:[%s2593_s7 + $0xe8] sm:$0xff] }
 0x11a   :  { %v721_v63 = vadd.f32 %v1851_v59, %v681_v55  ;;  %v1875_v2 = vpop.f32.mrb[7].mxu1  ;;  %v1735_v55 = vcombine.low %v1003_v47, %v1007_v48  ;;  %v1743_v59 = vcombine.low %v1011_v53, %v1015_v54  ;;  %v1752_v60 = vcombine.high %v1019_v57, %v1023_v58  ;;  %v1027_v61 = vld [vmem:[%s2593_s7 + $0x108] sm:$0xff]  ;;  %v1021_v53 = vld [vmem:[%s2593_s7 + $0xd8] sm:$0xff] }
 0x11b   :  { %v1031_v62 = vld [vmem:[%s2593_s7 + $0x128] sm:$0xff]  ;;  %v1025_v54 = vld [vmem:[%s2593_s7 + $0xf8] sm:$0xff] }
 0x11c   :  { %v761_v3 = vadd.f32 %v1873_v0, %v721_v63  ;;  %v1751_v63 = vcombine.low %v1019_v57, %v1023_v58  ;;  %v1760_v0 = vcombine.high %v1027_v61, %v1031_v62  ;;  %v1035_v1 = vld [vmem:[%s2593_s7 + $0x148] sm:$0xff]  ;;  %v1756_v58 = vcombine.high %v1021_v53, %v1025_v54 }
 0x11d   :  { %v1039_v2 = vld [vmem:[%s2593_s7 + $0x168] sm:$0xff] }
 0x11e   :  { %v766_v4 = vmax.f32 %v761_v3, 0.0  ;;  %v1759_v3 = vcombine.low %v1027_v61, %v1031_v62  ;;  %v1767_v7 = vcombine.low %v1035_v1, %v1039_v2  ;;  %v1029_v61 = vld [vmem:[%s2593_s7 + $0x118] sm:$0xff] }
 0x11f   :  { %v1033_v62 = vld [vmem:[%s2593_s7 + $0x138] sm:$0xff] }
 0x120   :  { %v767_v5 = vpack.c.bf16 %v766_v4, %v766_v4  ;;  %v1768_v4 = vcombine.high %v1035_v1, %v1039_v2  ;;  %v1764_v2 = vcombine.high %v1029_v61, %v1033_v62 }
 0x122   :  { %1912 = vmatmul.mubr.bf16.vlgmr.msra.gmra.mrb[8].mxu0 %v767_v5  ;;  %v1043_v5 = vld [vmem:[%s2593_s7 + $0x188] sm:$0xff] }
 0x123   :  { %1421 = vmatpush1.bf16.msra.mxu0 %v1725_v11  ;;  %v1776_v8 = vcombine.high %v1043_v5, %v1047_v6  ;;  %v1775_v9 = vcombine.low %v1043_v5, %v1047_v6  ;;  %v1054_v11 = vld [vmem:[%s2593_s7 + $0x1e0] sm:$0xff]  ;;  %1452 = vmatprep.mubr.bf16.mxu0 %v2024_v21  ;;  %v1037_v5 = vld [vmem:[%s2593_s7 + $0x158] sm:$0xff] }
 0x124   :  { %1422 = vmatprep.subr.bf16.mxu0 %v1734_v18  ;;  %v1782_v13 = vcombine.high %v1050_v10, %v1054_v11  ;;  %v1781_v15 = vcombine.low %v1050_v10, %v1054_v11  ;;  %v996_v18 = vld [vmem:[%s2593_s7 + $0x10] sm:$0xff]  ;;  %v1041_v6 = vld [vmem:[%s2593_s7 + $0x178] sm:$0xff] }
 0x125   :  { %v1772_v10 = vcombine.high %v1037_v5, %v1041_v6  ;;  %v1044_v11 = vld [vmem:[%s2593_s7 + $0x190] sm:$0xff] }
 0x127   :  { %1423 = vmatpush1.bf16.msra.mxu0 %v1733_v19  ;;  %v1000_v19 = vld [vmem:[%s2593_s7 + $0x30] sm:$0xff] }
 0x128   :  { %1424 = vmatprep.subr.bf16.mxu0 %v1742_v22  ;;  %v1729_v22 = vcombine.low %v996_v18, %v1000_v19 }
 0x12b   :  { %1425 = vmatpush1.bf16.msra.mxu0 %v1741_v23  ;;  %v1730_v23 = vcombine.high %v996_v18, %v1000_v19  ;;  %v1052_v19 = vld [vmem:[%s2593_s7 + $0x1d0] sm:$0xff] }
 0x12c   :  { %1426 = vmatprep.subr.bf16.mxu0 %v1750_v26  ;;  %v1732_v26 = vcombine.high %v997_v20, %v1001_v24  ;;  %v1056_v20 = vld [vmem:[%s2593_s7 + $0x1f0] sm:$0xff] }
 0x12f   :  { %1427 = vmatpush1.bf16.msra.mxu0 %v1749_v27  ;;  %v1716_v27 = vld [vmem:[%s2595_s6] ss:$0 sm:$0xff] }
 0x130   :  { %1428 = vmatprep.subr.bf16.mxu0 %v1758_v31 }
 0x133   :  { %1429 = vmatpush1.bf16.msra.mxu0 %v1757_v32  ;;  %v1004_v32 = vld [vmem:[%s2593_s7 + $0x50] sm:$0xff] }
 0x134   :  { %1430 = vmatprep.subr.bf16.mxu0 %v1766_v36  ;;  %v1005_v36 = vld [vmem:[%s2593_s7 + $0x58] sm:$0xff]  ;;  %v1737_v47 = vcombine.low %v1004_v32, %v1008_v34 }
 0x137   :  { %1431 = vmatpush1.bf16.msra.mxu0 %v1765_v37  ;;  %v1009_v37 = vld [vmem:[%s2593_s7 + $0x78] sm:$0xff] }
 0x138   :  { %1432 = vmatprep.subr.bf16.mxu0 %v1774_v40  ;;  %v1739_v48 = vcombine.low %v1005_v36, %v1009_v37 }
 0x13b   :  { %1433 = vmatpush1.bf16.msra.mxu0 %v1773_v41  ;;  %v1738_v41 = vcombine.high %v1004_v32, %v1008_v34  ;;  %v1058_v32 = vld [vmem:[%s2596_s8] sm:$0xff]  ;;  %v1074_v34 = vsub.s32 3, %v2153_v30 }
 0x13c   :  { %1434 = vmatprep.subr.bf16.mxu0 %v1782_v13  ;;  %v1045_v13 = vld [vmem:[%s2593_s7 + $0x198] sm:$0xff] }
 0x13f   :  { %1435 = vmatpush1.bf16.msra.mxu0 %v1781_v15 }
 0x140   :  { %1502 = vmatprep.subr.bf16.mxu0 %v1730_v23 }
 0x1f5   :  { %v873_v43 = vpop.f32.mrb[8].mxu0 }
 0x1f6   :  { %v874_v44 = vadd.f32 %v1707_v42, %v873_v43  ;;  %v1913_v45 = vpop.f32.mrb[9].mxu0  ;;  %v1740_v42 = vcombine.high %v1005_v36, %v1009_v37  ;;  %v1012_v43 = vld [vmem:[%s2593_s7 + $0x90] sm:$0xff] }
 0x1f7   :  { %v876_v46 = vpop.f32.mrb[10].mxu0  ;;  %v1013_v45 = vld [vmem:[%s2593_s7 + $0x98] sm:$0xff] }
 0x1f8   :  { %v879_v49 = vmax.f32 %v874_v44, 0.0  ;;  %v1914_v50 = vpop.f32.mrb[11].mxu0  ;;  %v1016_v44 = vld [vmem:[%s2593_s7 + $0xb0] sm:$0xff]  ;;  %v1017_v46 = vld [vmem:[%s2593_s7 + $0xb8] sm:$0xff] }
 0x1f9   :  { %v1748_v50 = vcombine.high %v1013_v45, %v1017_v46 }
 0x1fa   :  { %v880_v51 = vpack.c.bf16 %v879_v49, %v879_v49  ;;  %v1746_v49 = vcombine.high %v1012_v43, %v1016_v44 }
 0x1fc   :  { %1932 = vmatmul.mubr.bf16.vlgmr.msra.gmra.mrb[8].mxu1 %v880_v51  ;;  %v1020_v51 = vld [vmem:[%s2593_s7 + $0xd0] sm:$0xff] }
 0x1fd   :  { %1462 = vmatpush1.bf16.msra.mxu1 %v1727_v16  ;;  %v1783_v16 = vcombine.low %v1051_v12, %v1055_v14  ;;  %1493 = vmatprep.mubr.bf16.mxu1 %v2024_v21  ;;  %v1048_v12 = vld [vmem:[%s2593_s7 + $0x1b0] sm:$0xff]  ;;  %v1049_v14 = vld [vmem:[%s2593_s7 + $0x1b8] sm:$0xff] }
 0x1fe   :  { %1463 = vmatprep.subr.bf16.mxu1 %v1736_v52  ;;  %v1024_v52 = vld [vmem:[%s2593_s7 + $0xf0] sm:$0xff]  ;;  %v1780_v18 = vcombine.high %v1045_v13, %v1049_v14  ;;  %v1777_v23 = vcombine.low %v1044_v11, %v1048_v12  ;;  %v1779_v24 = vcombine.low %v1045_v13, %v1049_v14 }
 0x1ff   :  { %v1754_v57 = vcombine.high %v1020_v51, %v1024_v52 }
 0x201   :  { %1464 = vmatpush1.bf16.msra.mxu1 %v1735_v55  ;;  %v1745_v55 = vcombine.low %v1012_v43, %v1016_v44 }
 0x202   :  { %1465 = vmatprep.subr.bf16.mxu1 %v1744_v56  ;;  %v1747_v56 = vcombine.low %v1013_v45, %v1017_v46 }
 0x205   :  { %1466 = vmatpush1.bf16.msra.mxu1 %v1743_v59  ;;  %v1028_v59 = vld [vmem:[%s2593_s7 + $0x110] sm:$0xff] }
 0x206   :  { %1467 = vmatprep.subr.bf16.mxu1 %v1752_v60  ;;  %v1032_v60 = vld [vmem:[%s2593_s7 + $0x130] sm:$0xff] }
 0x207   :  { %v1762_v1 = vcombine.high %v1028_v59, %v1032_v60 }
 0x209   :  { %1468 = vmatpush1.bf16.msra.mxu1 %v1751_v63  ;;  %v1753_v63 = vcombine.low %v1020_v51, %v1024_v52 }
 0x20a   :  { %1469 = vmatprep.subr.bf16.mxu1 %v1760_v0  ;;  %v1755_v0 = vcombine.low %v1021_v53, %v1025_v54 }
 0x20d   :  { %1470 = vmatpush1.bf16.msra.mxu1 %v1759_v3  ;;  %v1036_v3 = vld [vmem:[%s2593_s7 + $0x150] sm:$0xff] }
 0x20e   :  { %1471 = vmatprep.subr.bf16.mxu1 %v1768_v4  ;;  %v1040_v4 = vld [vmem:[%s2593_s7 + $0x170] sm:$0xff] }
 0x20f   :  { %v1769_v15 = vcombine.low %v1036_v3, %v1040_v4 }
 0x211   :  { %1472 = vmatpush1.bf16.msra.mxu1 %v1767_v7  ;;  %v1761_v7 = vcombine.low %v1028_v59, %v1032_v60 }
 0x212   :  { %1473 = vmatprep.subr.bf16.mxu1 %v1776_v8  ;;  %v1763_v8 = vcombine.low %v1029_v61, %v1033_v62  ;;  %v1078_v61 = vsub.s32 4, %v2153_v30  ;;  %v1086_v62 = vsub.s32 6, %v2153_v30 }
 0x215   :  { %1474 = vmatpush1.bf16.msra.mxu1 %v1775_v9  ;;  %v1770_v9 = vcombine.high %v1036_v3, %v1040_v4 }
 0x216   :  { %1475 = vmatprep.subr.bf16.mxu1 %v1784_v17  ;;  %v1778_v17 = vcombine.high %v1044_v11, %v1048_v12 }
 0x219   :  { %1476 = vmatpush1.bf16.msra.mxu1 %v1783_v16  ;;  %v1771_v16 = vcombine.low %v1037_v5, %v1041_v6 }
 0x21a   :  { %1543 = vmatprep.subr.bf16.mxu1 %v1732_v26 }
 0x2cf   :  { %v986_v28 = vpop.f32.mrb[8].mxu1 }
 0x2d0   :  { %v987_v29 = vadd.f32 %v1716_v27, %v986_v28  ;;  %v1933_v31 = vpop.f32.mrb[9].mxu1  ;;  %v1785_v27 = vcombine.low %v1052_v19, %v1056_v20 }
 0x2d1   :  { %v989_v33 = vpop.f32.mrb[10].mxu1  ;;  %v1070_v31 = vsub.s32 2, %v2153_v30 }
 0x2d2   :  { %v992_v38 = vmax.f32 %v987_v29, 0.0  ;;  %v1934_v39 = vpop.f32.mrb[11].mxu1  ;;  %v1062_v29 = vsub.s32 0, %v2153_v30  ;;  %v1066_v33 = vsub.s32 1, %v2153_v30 }
 0x2d3   :  { %v1071_v37 = vrot.slane %v1058_v32, %v1070_v31  ;;  %v1075_v39 = vrot.slane %v1058_v32, %v1074_v34 }
 0x2d4   :  { %v2489_v40 = vpack.c.bf16 %v992_v38, %v992_v38  ;;  %v1063_v36 = vrot.slane %v1058_v32, %v1062_v29  ;;  %v1067_v38 = vrot.slane %v1058_v32, %v1066_v33 }
 0x2d6   :  { %1453 = vmatmul.mubr.bf16.vlgmr.msra.gmra.mrb[12].mxu0 %v2489_v40  ;;  %1494 = vmatmul.mubr.bf16.vlgmr.msra.gmra.mrb[12].mxu1 %v2489_v40 }
 0x2d7   :  { %1503 = vmatpush1.bf16.msra.mxu0 %v1729_v22  ;;  %1544 = vmatpush1.bf16.msra.mxu1 %v1731_v25  ;;  %v1057_v22 = vld [vmem:[%s2593_s7 + $0x1f8] sm:$0xff]  ;;  %v1786_v25 = vcombine.high %v1052_v19, %v1056_v20 }
 0x2d8   :  { %1504 = vmatprep.subr.bf16.mxu0 %v1738_v41  ;;  %1545 = vmatprep.subr.bf16.mxu1 %v1740_v42 }
 0x2d9   :  { %1534 = vmatprep.mubr.bf16.mxu0 %v2024_v21  ;;  %1575 = vmatprep.mubr.bf16.mxu1 %v2024_v21  ;;  %v1053_v21 = vld [vmem:[%s2593_s7 + $0x1d8] sm:$0xff] }
 0x2da   :  { %v1788_v26 = vcombine.high %v1053_v21, %v1057_v22  ;;  %v1787_v28 = vcombine.low %v1053_v21, %v1057_v22 }
 0x2db   :  { %1505 = vmatpush1.bf16.msra.mxu0 %v1737_v47  ;;  %1546 = vmatpush1.bf16.msra.mxu1 %v1739_v48 }
 0x2dc   :  { %1506 = vmatprep.subr.bf16.mxu0 %v1746_v49  ;;  %1547 = vmatprep.subr.bf16.mxu1 %v1748_v50 }
 0x2df   :  { %1507 = vmatpush1.bf16.msra.mxu0 %v1745_v55  ;;  %1548 = vmatpush1.bf16.msra.mxu1 %v1747_v56 }
 0x2e0   :  { %1508 = vmatprep.subr.bf16.mxu0 %v1754_v57  ;;  %1549 = vmatprep.subr.bf16.mxu1 %v1756_v58 }
 0x2e3   :  { %1509 = vmatpush1.bf16.msra.mxu0 %v1753_v63  ;;  %1550 = vmatpush1.bf16.msra.mxu1 %v1755_v0  ;;  %v1082_v63 = vsub.s32 5, %v2153_v30  ;;  %v1090_v0 = vsub.s32 7, %v2153_v30 }
 0x2e4   :  { %1510 = vmatprep.subr.bf16.mxu0 %v1762_v1  ;;  %1551 = vmatprep.subr.bf16.mxu1 %v1764_v2  ;;  %v1079_v1 = vrot.slane %v1058_v32, %v1078_v61  ;;  %v1087_v2 = vrot.slane %v1058_v32, %v1086_v62 }
 0x2e5   :  { %v1083_v3 = vrot.slane %v1058_v32, %v1082_v63  ;;  %v1091_v4 = vrot.slane %v1058_v32, %v1090_v0 }
 0x2e7   :  { %1511 = vmatpush1.bf16.msra.mxu0 %v1761_v7  ;;  %1552 = vmatpush1.bf16.msra.mxu1 %v1763_v8 }
 0x2e8   :  { %1512 = vmatprep.subr.bf16.mxu0 %v1770_v9  ;;  %1553 = vmatprep.subr.bf16.mxu1 %v1772_v10 }
 0x2eb   :  { %1513 = vmatpush1.bf16.msra.mxu0 %v1769_v15  ;;  %1554 = vmatpush1.bf16.msra.mxu1 %v1771_v16 }
 0x2ec   :  { %1514 = vmatprep.subr.bf16.mxu0 %v1778_v17  ;;  %1555 = vmatprep.subr.bf16.mxu1 %v1780_v18 }
 0x2ef   :  { %1515 = vmatpush1.bf16.msra.mxu0 %v1777_v23  ;;  %1556 = vmatpush1.bf16.msra.mxu1 %v1779_v24 }
 0x2f0   :  { %1516 = vmatprep.subr.bf16.mxu0 %v1786_v25  ;;  %1557 = vmatprep.subr.bf16.mxu1 %v1788_v26 }
 0x2f3   :  { %1517 = vmatpush1.bf16.msra.mxu0 %v1785_v27  ;;  %1558 = vmatpush1.bf16.msra.mxu1 %v1787_v28 }
 0x2f6   :  { %1535 = vmatmul.mubr.bf16.vlgmr.msra.gmra.mrb[16].mxu0 %v2489_v40  ;;  %1576 = vmatmul.mubr.bf16.vlgmr.msra.gmra.mrb[16].mxu1 %v2489_v40 }
 0x3a9   :  { %v1454_v41 = vpop.f32.mrb[12].mxu0  ;;  %v1495_v42 = vpop.f32.mrb[12].mxu1 }
 0x3aa   :  { %v1455_v43 = vadd.f32 %v1454_v41, %v1063_v36  ;;  %v1496_v40 = vadd.f32 %v1495_v42, %v1071_v37  ;;  %v1456_v44 = vpop.f32.mrb[13].mxu0  ;;  %v1497_v45 = vpop.f32.mrb[13].mxu1 }
 0x3ab   :  { %v1457_v46 = vadd.f32 %v1456_v44, %v1067_v38  ;;  %v1498_v47 = vadd.f32 %v1497_v45, %v1075_v39  ;;  %v1458_v48 = vpop.f32.mrb[14].mxu0  ;;  %v1499_v49 = vpop.f32.mrb[14].mxu1 }
 0x3ac   :  { %v1584_v50 = vmax.f32 %v1455_v43, 0.0  ;;  %v1586_v51 = vmax.f32 %v1496_v40, 0.0  ;;  %v1459_v52 = vpop.f32.mrb[15].mxu0  ;;  %v1500_v53 = vpop.f32.mrb[15].mxu1 }
 0x3ad   :  { %v1585_v54 = vmax.f32 %v1457_v46, 0.0  ;;  %v1587_v55 = vmax.f32 %v1498_v47, 0.0 }
 0x3af   :  { %v1600_v56 = vcombine.low %v1584_v50, %v1585_v54  ;;  %v1601_v57 = vcombine.low %v1586_v51, %v1587_v55 }
 0x3b1   :  { %v1608_v58 = vrot.slane %v1600_v56, %v2168_v35  ;;  %v1615_v59 = vrot.slane %v1601_v57, %v2168_v35 }
 0x3b3   :  { %v1616_v60 = vcombine.low %v1608_v58, %v1615_v59 }
 0x3b5   :  { %1636 = vst [vmem:[%s2597_s9] sm:$0xff] %v1616_v60 }
 0x3c9   :  { %v1536_v5 = vpop.f32.mrb[16].mxu0  ;;  %v1577_v6 = vpop.f32.mrb[16].mxu1 }
 0x3ca   :  { %v1537_v7 = vadd.f32 %v1536_v5, %v1079_v1  ;;  %v1578_v8 = vadd.f32 %v1577_v6, %v1087_v2  ;;  %v1538_v9 = vpop.f32.mrb[17].mxu0  ;;  %v1579_v10 = vpop.f32.mrb[17].mxu1 }
 0x3cb   :  { %v1539_v11 = vadd.f32 %v1538_v9, %v1083_v3  ;;  %v1580_v12 = vadd.f32 %v1579_v10, %v1091_v4  ;;  %v1540_v13 = vpop.f32.mrb[18].mxu0  ;;  %v1581_v14 = vpop.f32.mrb[18].mxu1 }
 0x3cc   :  { %v1588_v15 = vmax.f32 %v1537_v7, 0.0  ;;  %v1590_v16 = vmax.f32 %v1578_v8, 0.0  ;;  %v1541_v17 = vpop.f32.mrb[19].mxu0  ;;  %v1582_v18 = vpop.f32.mrb[19].mxu1 }
 0x3cd   :  { %v1589_v19 = vmax.f32 %v1539_v11, 0.0  ;;  %v1591_v30 = vmax.f32 %v1580_v12, 0.0 }
 0x3cf   :  { %v1617_v20 = vcombine.low %v1588_v15, %v1589_v19  ;;  %v1618_v21 = vcombine.low %v1590_v16, %v1591_v30 }
 0x3d1   :  { %v1625_v22 = vrot.slane %v1617_v20, %v2168_v35  ;;  %v1632_v23 = vrot.slane %v1618_v21, %v2168_v35 }
 0x3d3   :  { %v1633_v24 = vcombine.low %v1625_v22, %v1632_v23 }
 0x3d5   :  { %1637 = vst [vmem:[%s2597_s9 + $0x8] sm:$0xff] %v1633_v24 }

</bundles_post_ra>
